<compile_context>
chip_gen: v7x
topology: tpu7x:2x2x1
jax: 0.10.0
libtpu: 0.0.40
codegen_flags: <defaults>
</compile_context>

<pallas_src>
import numpy as np
import jax
import jax.numpy as jnp
from jax.experimental import pallas as pl
from jax.experimental.pallas import tpu as pltpu


# ----------------------------------------------------------------------------
# Deterministic mel filter bank (numpy re-implementation of librosa.filters.mel,
# Slaney mel scale + Slaney normalization — the librosa defaults).
# ----------------------------------------------------------------------------
def _hz_to_mel(f):
    f = np.atleast_1d(np.asarray(f, dtype=np.float64))
    f_sp = 200.0 / 3
    mels = f / f_sp
    min_log_hz = 1000.0
    min_log_mel = min_log_hz / f_sp
    logstep = np.log(6.4) / 27.0
    log_t = f >= min_log_hz
    mels[log_t] = min_log_mel + np.log(f[log_t] / min_log_hz) / logstep
    return mels


def _mel_to_hz(m):
    m = np.atleast_1d(np.asarray(m, dtype=np.float64))
    f_sp = 200.0 / 3
    freqs = f_sp * m
    min_log_hz = 1000.0
    min_log_mel = min_log_hz / f_sp
    logstep = np.log(6.4) / 27.0
    log_t = m >= min_log_mel
    freqs[log_t] = min_log_hz * np.exp(logstep * (m[log_t] - min_log_mel))
    return freqs


def mel_filterbank(sr, n_fft, n_mels, fmin, fmax):
    n_freq = n_fft // 2 + 1
    fftfreqs = np.linspace(0.0, sr / 2.0, n_freq)
    mel_min = _hz_to_mel(fmin)[0]
    mel_max = _hz_to_mel(fmax)[0]
    mel_f = _mel_to_hz(np.linspace(mel_min, mel_max, n_mels + 2))
    fdiff = np.diff(mel_f)
    ramps = mel_f[:, None] - fftfreqs[None, :]
    lower = -ramps[:-2] / fdiff[:-1, None]
    upper = ramps[2:] / fdiff[1:, None]
    weights = np.maximum(0.0, np.minimum(lower, upper))
    enorm = 2.0 / (mel_f[2 : n_mels + 2] - mel_f[:n_mels])
    weights *= enorm[:, None]
    return weights.astype(np.float32)  # (n_mels, n_freq)


# ----------------------------------------------------------------------------
# Pallas kernel + wrapper
# ----------------------------------------------------------------------------
def logmel_filterbank(x, melW, *, is_log=True, ref=1.0, amin=1e-10, top_db=80.0,
                      tile_r=2048):
    """x: (B, C, T, F) float32, melW: (F, M) float32 -> (B, C, T, M) float32."""
    B, C, T, F = x.shape
    M = melW.shape[1]
    R = B * C * T

    # Effective row tile: large for HBM bandwidth, but never larger than the
    # (8-aligned) row count; always a multiple of 8 (sublane constraint).
    r8 = -(-R // 8) * 8
    tile_r_eff = max(8, min(int(tile_r) // 8 * 8, r8))
    R_pad = -(-R // tile_r_eff) * tile_r_eff
    n_tiles = R_pad // tile_r_eff

    xf = x.reshape(R, F)
    if R_pad != R:
        # Zero rows -> mel = 0 -> clamped to amin -> the minimum possible dB
        # value, so padding can never raise the global max used for top_db.
        xf = jnp.pad(xf, ((0, R_pad - R), (0, 0)))

    db_offset = float(10.0 * np.log10(np.maximum(amin, ref)))
    amin_f = float(amin)

    def mel_log_kernel(x_ref, w_ref, o_ref, max_ref):
        mel = jnp.dot(x_ref[...], w_ref[...], preferred_element_type=jnp.float32)
        if is_log:
            val = 10.0 * jnp.log10(jnp.maximum(mel, amin_f)) - db_offset
        else:
            val = mel
        o_ref[...] = val.astype(o_ref.dtype)
        # Per-tile max -> its own SMEM slot: no cross-iteration dependence, so
        # the grid axis can be 'parallel' (megacore-sharded).
        max_ref[0, 0] = jnp.max(val)

    log_spec, tile_max = pl.pallas_call(
        mel_log_kernel,
        out_shape=(
            jax.ShapeDtypeStruct((R_pad, M), jnp.float32),
            jax.ShapeDtypeStruct((n_tiles, 1), jnp.float32),
        ),
        grid=(n_tiles,),
        in_specs=[
            pl.BlockSpec((tile_r_eff, F), lambda i: (i, 0)),
            pl.BlockSpec((F, M), lambda i: (0, 0)),   # melW: resident, constant index
        ],
        out_specs=(
            pl.BlockSpec((tile_r_eff, M), lambda i: (i, 0)),
            pl.BlockSpec((1, 1), lambda i: (i, 0), memory_space=pltpu.SMEM),
        ),
        compiler_params=pltpu.CompilerParams(
            dimension_semantics=("parallel",),
            vmem_limit_bytes=32 * 1024 * 1024,
        ),
    )(xf, melW)

    out = log_spec[:R]

    if is_log and top_db is not None:
        if top_db < 0:
            raise ValueError("top_db must be non-negative")
        gmax = jnp.max(tile_max)           # tiny (n_tiles,1) reduce in XLA
        out = jnp.maximum(out, gmax - float(top_db))   # fused elementwise clamp

    return out.reshape(B, C, T, M)


# ----------------------------------------------------------------------------
# Demo / correctness check
# ----------------------------------------------------------------------------
def _reference(x, melW, ref_v, amin, top_db):
    mel_ref = jnp.matmul(x, melW)
    log_ref = 10.0 * jnp.log10(jnp.clip(mel_ref, amin, None))
    log_ref = log_ref - 10.0 * np.log10(np.maximum(amin, ref_v))
    log_ref = jnp.clip(log_ref, jnp.max(log_ref) - top_db, None)
    return log_ref


if __name__ == "__main__":
    # Small synthetic config consistent with the module (n_fft scaled down).
    sr, n_fft, n_mels, fmin, fmax = 32000, 512, 32, 50, 14000
    ref_v, amin, top_db = 1.0, 1e-10, 80.0
    F = n_fft // 2 + 1  # 257

    # Deterministic parameters (synthetic, librosa-equivalent mel matrix).
    melW = jnp.asarray(mel_filterbank(sr, n_fft, n_mels, fmin, fmax).T)  # (F, M)

    key = jax.random.PRNGKey(0)

    # Case 1: default large-tile path (single tile here, rows < tile_r).
    B, C, T = 2, 1, 64
    x = jax.random.uniform(key, (B, C, T, F), dtype=jnp.float32,
                           minval=0.0, maxval=10.0)
    out = logmel_filterbank(x, melW, is_log=True, ref=ref_v, amin=amin,
                            top_db=top_db)
    out = jax.block_until_ready(out)
    log_ref = _reference(x, melW, ref_v, amin, top_db)
    assert out.shape == (B, C, T, n_mels)
    assert jnp.allclose(out, log_ref, rtol=1e-4, atol=1e-4), "mismatch (case 1)"

    # Case 2: multi-tile + row padding path (R=120 rows, tile_r=64 -> pad to 128).
    B2, C2, T2 = 2, 1, 60
    x2 = jax.random.uniform(jax.random.PRNGKey(0), (B2, C2, T2, F),
                            dtype=jnp.float32, minval=0.0, maxval=10.0)
    out2 = logmel_filterbank(x2, melW, is_log=True, ref=ref_v, amin=amin,
                             top_db=top_db, tile_r=64)
    out2 = jax.block_until_ready(out2)
    log_ref2 = _reference(x2, melW, ref_v, amin, top_db)
    assert out2.shape == (B2, C2, T2, n_mels)
    assert jnp.allclose(out2, log_ref2, rtol=1e-4, atol=1e-4), "mismatch (case 2)"

    print("KERNEL_OK")
</pallas_src>

<mosaic_0001>
module attributes {stable_mosaic.version = 11 : i64} {
  func.func @mel_log_kernel(%arg0: i32, %arg1: memref<128x257xf32, #tpu.memory_space<vmem>>, %arg2: memref<257x32xf32, #tpu.memory_space<vmem>>, %arg3: memref<128x32xf32, #tpu.memory_space<vmem>>, %arg4: memref<1x1xf32, #tpu.memory_space<smem>>) attributes {dimension_semantics = [#tpu.dimension_semantics<parallel>], iteration_bounds = array<i64: 1>, scalar_prefetch = 0 : i64, scratch_operands = 0 : i64, tpu.core_type = #tpu.core_type<tc>, window_params = [{transform_indices = @transform_0, window_bounds = array<i64: 128, 257>}, {pipeline_mode = #tpu.pipeline_mode<synchronous>, transform_indices = @transform_1, window_bounds = array<i64: 257, 32>}, {transform_indices = @transform_2, window_bounds = array<i64: 128, 32>}, {transform_indices = @transform_3, window_bounds = array<i64: 1, 1>}]} {
    %c0 = arith.constant 0 : index
    %c0_0 = arith.constant 0 : index
    %0 = vector.load %arg1[%c0, %c0_0] : memref<128x257xf32, #tpu.memory_space<vmem>>, vector<128x257xf32>
    %c0_1 = arith.constant 0 : index
    %c0_2 = arith.constant 0 : index
    %1 = vector.load %arg2[%c0_1, %c0_2] : memref<257x32xf32, #tpu.memory_space<vmem>>, vector<257x32xf32>
    %cst = arith.constant dense<0.000000e+00> : vector<128x32xf32>
    %2 = tpu.matmul %0, %1, %cst {dimension_numbers = #tpu.dot_dimension_numbers<[1], [0], [0], [1], [0, 0, 1, 1], [], []>} : vector<128x257xf32>, vector<257x32xf32>, vector<128x32xf32> -> vector<128x32xf32>
    %cst_3 = arith.constant 1.000000e-10 : f32
    %3 = vector.broadcast %cst_3 : f32 to vector<128x32xf32>
    %4 = arith.maximumf %2, %3 : vector<128x32xf32>
    %5 = math.log %4 : vector<128x32xf32>
    %cst_4 = arith.constant 0.434294492 : f32
    %6 = vector.broadcast %cst_4 : f32 to vector<128x32xf32>
    %7 = arith.mulf %5, %6 : vector<128x32xf32>
    %cst_5 = arith.constant 1.000000e+01 : f32
    %8 = vector.broadcast %cst_5 : f32 to vector<128x32xf32>
    %9 = arith.mulf %8, %7 : vector<128x32xf32>
    %cst_6 = arith.constant 0.000000e+00 : f32
    %10 = vector.broadcast %cst_6 : f32 to vector<128x32xf32>
    %11 = arith.subf %9, %10 : vector<128x32xf32>
    %c0_7 = arith.constant 0 : index
    %c0_8 = arith.constant 0 : index
    %12 = vector.load %arg3[%c0_7, %c0_8] : memref<128x32xf32, #tpu.memory_space<vmem>>, vector<128x32xf32>
    tpu.vector_store %arg3[%c0_7, %c0_8], %11 {strides = array<i32>} : memref<128x32xf32, #tpu.memory_space<vmem>>, vector<128x32xf32>,
    %13 = vector.shape_cast %11 : vector<128x32xf32> to vector<1x128x32xf32>
    %cst_9 = arith.constant dense<0xFF800000> : vector<1xf32>
    %14 = vector.multi_reduction <maximumf>, %13, %cst_9 [1, 2] : vector<1x128x32xf32> to vector<1xf32>
    %15 = vector.shape_cast %14 : vector<1xf32> to vector<1x1x1xf32>
    %16 = vector.extract %15[0, 0, 0] : f32 from vector<1x1x1xf32>
    %c0_10 = arith.constant 0 : index
    %c0_11 = arith.constant 0 : index
    %17 = memref.load %arg4[%c0_10, %c0_11] : memref<1x1xf32, #tpu.memory_space<smem>>
    memref.store %16, %arg4[%c0_10, %c0_11] : memref<1x1xf32, #tpu.memory_space<smem>>
    return
  }
  func.func @transform_0(%arg0: i32) -> (i32, i32) {
    %c0_i32 = arith.constant 0 : i32
    %c0_i32_0 = arith.constant 0 : i32
    return %arg0, %c0_i32 : i32, i32
  }
  func.func @transform_1(%arg0: i32) -> (i32, i32) {
    %c0_i32 = arith.constant 0 : i32
    %c0_i32_0 = arith.constant 0 : i32
    %c0_i32_1 = arith.constant 0 : i32
    return %c0_i32, %c0_i32_0 : i32, i32
  }
  func.func @transform_2(%arg0: i32) -> (i32, i32) {
    %c0_i32 = arith.constant 0 : i32
    %c0_i32_0 = arith.constant 0 : i32
    return %arg0, %c0_i32 : i32, i32
  }
  func.func @transform_3(%arg0: i32) -> (i32, i32) {
    %c0_i32 = arith.constant 0 : i32
    %c0_i32_0 = arith.constant 0 : i32
    return %arg0, %c0_i32 : i32, i32
  }
}

</mosaic_0001>

<bundles_post_ra>
// kernel: tpu_custom_call.1
= control target key start
LH: loop header
LB: loop body
LE: loop exit
PB: predicated region body
PF: predicated region fallthrough
CT: control target
= control target key end

     0   :  { %s1220_s0 = inlined_call_operand.vmem [shape: f32[128,257], index: 0, kind: input, shape index: {}]   ;;  %s1221_s1 = inlined_call_operand.vmem [shape: f32[257,32], index: 1, kind: input, shape index: {}]   ;;  %s1222_s2 = inlined_call_operand.vmem [shape: f32[128,32], index: 2, kind: output, shape index: {0}]   ;;  %s1223_s3 = inlined_call_operand.hbm [shape: f32[1,1], index: 3, kind: output, shape index: {1}]  }
   0x1   :  { %v78_v0 = vld [vmem:[%s1221_s1 + $0x80] sm:$0xff]  ;;  %v79_v1 = vld [vmem:[%s1221_s1 + $0x88] sm:$0xff]  ;;  %v80_v5 = vld [vmem:[%s1221_s1 + $0x90] sm:$0xff] }
   0x2   :  { %v62_v2 = vld [vmem:[%s1221_s1] sm:$0xff]  ;;  %v734_v3 = vpack.c.bf16 %v79_v1, %v78_v0  ;;  %v63_v4 = vld [vmem:[%s1221_s1 + $0x8] sm:$0xff]  ;;  %v81_v6 = vld [vmem:[%s1221_s1 + $0x98] sm:$0xff] }
   0x3   :  { %v736_v7 = vpack.c.bf16 %v63_v4, %v62_v2  ;;  %v738_v8 = vpack.c.bf16 %v81_v6, %v80_v5  ;;  %v64_v9 = vld [vmem:[%s1221_s1 + $0x10] sm:$0xff]  ;;  %v65_v10 = vld [vmem:[%s1221_s1 + $0x18] sm:$0xff]  ;;  %v82_v11 = vld [vmem:[%s1221_s1 + $0xa0] sm:$0xff] }
   0x4   :  { %735 = vmatprep.subr.bf16.mxu0 %v734_v3  ;;  %766 = vmatprep.subr.bf16.mxu1 %v734_v3  ;;  %v83_v12 = vld [vmem:[%s1221_s1 + $0xa8] sm:$0xff]  ;;  %v740_v13 = vpack.c.bf16 %v65_v10, %v64_v9  ;;  %v66_v15 = vld [vmem:[%s1221_s1 + $0x20] sm:$0xff]  ;;  %v84_v17 = vld [vmem:[%s1221_s1 + $0xb0] sm:$0xff] }
   0x5   :  { %737 = vmatpush3.bf16.msra.mxu0 %v736_v7  ;;  %774 = vmatpush3.bf16.msra.mxu1 %v736_v7  ;;  %v742_v14 = vpack.c.bf16 %v83_v12, %v82_v11  ;;  %v67_v16 = vld [vmem:[%s1221_s1 + $0x28] sm:$0xff]  ;;  %v85_v18 = vld [vmem:[%s1221_s1 + $0xb8] sm:$0xff]  ;;  %v68_v21 = vld [vmem:[%s1221_s1 + $0x30] sm:$0xff] }
   0x6   :  { %739 = vmatprep.subr.bf16.mxu0 %v738_v8  ;;  %767 = vmatprep.subr.bf16.mxu1 %v738_v8  ;;  %v744_v19 = vpack.c.bf16 %v67_v16, %v66_v15  ;;  %v746_v20 = vpack.c.bf16 %v85_v18, %v84_v17  ;;  %v69_v22 = vld [vmem:[%s1221_s1 + $0x38] sm:$0xff]  ;;  %v86_v23 = vld [vmem:[%s1221_s1 + $0xc0] sm:$0xff]  ;;  %v87_v24 = vld [vmem:[%s1221_s1 + $0xc8] sm:$0xff] }
   0x7   :  { %v15_v25 = vld [vmem:[%s1220_s0 + $0x8] sm:$0xff]  ;;  %v748_v27 = vpack.c.bf16 %v69_v22, %v68_v21  ;;  %v750_v28 = vpack.c.bf16 %v87_v24, %v86_v23  ;;  %v70_v29 = vld [vmem:[%s1221_s1 + $0x40] sm:$0xff]  ;;  %v88_v31 = vld [vmem:[%s1221_s1 + $0xd0] sm:$0xff] }
   0x8   :  { %212 = vmatprep.mubr.f32.mxu0 %v15_v25  ;;  %v51_v26 = vld [vmem:[%s1220_s0 + $0x128] sm:$0xff]  ;;  %v89_v32 = vld [vmem:[%s1221_s1 + $0xd8] sm:$0xff]  ;;  %v72_v35 = vld [vmem:[%s1221_s1 + $0x50] sm:$0xff] }
   0x9   :  { %741 = vmatpush3.bf16.msra.mxu0 %v740_v13  ;;  %775 = vmatpush3.bf16.msra.mxu1 %v740_v13  ;;  %v71_v30 = vld [vmem:[%s1221_s1 + $0x48] sm:$0xff]  ;;  %v754_v34 = vpack.c.bf16 %v89_v32, %v88_v31  ;;  %v73_v36 = vld [vmem:[%s1221_s1 + $0x58] sm:$0xff]  ;;  %v90_v37 = vld [vmem:[%s1221_s1 + $0xe0] sm:$0xff] }
   0xa   :  { %743 = vmatprep.subr.bf16.mxu0 %v742_v14  ;;  %768 = vmatprep.subr.bf16.mxu1 %v742_v14  ;;  %v752_v33 = vpack.c.bf16 %v71_v30, %v70_v29  ;;  %v91_v38 = vld [vmem:[%s1221_s1 + $0xe8] sm:$0xff]  ;;  %v756_v39 = vpack.c.bf16 %v73_v36, %v72_v35  ;;  %v74_v41 = vld [vmem:[%s1221_s1 + $0x60] sm:$0xff]  ;;  %v92_v43 = vld [vmem:[%s1221_s1 + $0xf0] sm:$0xff] }
   0xb   :  { %272 = vmatprep.mubr.f32.mxu1 %v51_v26  ;;  %v758_v40 = vpack.c.bf16 %v91_v38, %v90_v37  ;;  %v75_v42 = vld [vmem:[%s1221_s1 + $0x68] sm:$0xff]  ;;  %v93_v44 = vld [vmem:[%s1221_s1 + $0xf8] sm:$0xff]  ;;  %v76_v47 = vld [vmem:[%s1221_s1 + $0x70] sm:$0xff] }
   0xc   :  { %v760_v45 = vpack.c.bf16 %v75_v42, %v74_v41  ;;  %v762_v46 = vpack.c.bf16 %v93_v44, %v92_v43  ;;  %v77_v48 = vld [vmem:[%s1221_s1 + $0x78] sm:$0xff] }
   0xd   :  { %745 = vmatpush3.bf16.msra.mxu0 %v744_v19  ;;  %776 = vmatpush3.bf16.msra.mxu1 %v744_v19 }
   0xe   :  { %747 = vmatprep.subr.bf16.mxu0 %v746_v20  ;;  %769 = vmatprep.subr.bf16.mxu1 %v746_v20 }
  0x11   :  { %749 = vmatpush3.bf16.msra.mxu0 %v748_v27  ;;  %777 = vmatpush3.bf16.msra.mxu1 %v748_v27 }
  0x12   :  { %751 = vmatprep.subr.bf16.mxu0 %v750_v28  ;;  %770 = vmatprep.subr.bf16.mxu1 %v750_v28 }
  0x15   :  { %753 = vmatpush3.bf16.msra.mxu0 %v752_v33  ;;  %778 = vmatpush3.bf16.msra.mxu1 %v752_v33 }
  0x16   :  { %755 = vmatprep.subr.bf16.mxu0 %v754_v34  ;;  %771 = vmatprep.subr.bf16.mxu1 %v754_v34 }
  0x19   :  { %757 = vmatpush3.bf16.msra.mxu0 %v756_v39  ;;  %779 = vmatpush3.bf16.msra.mxu1 %v756_v39 }
  0x1a   :  { %759 = vmatprep.subr.bf16.mxu0 %v758_v40  ;;  %772 = vmatprep.subr.bf16.mxu1 %v758_v40 }
  0x1b   :  { %9 = vsyncpa [#allocation3], 0  ;;  %v764_v49 = vpack.c.bf16 %v77_v48, %v76_v47  ;;  %v94_v50 = vld [vmem:[%s1221_s1 + $0x100] sm:$0x1]  ;;  %vm144_vm0 = vcmask 1040384   ;;  %v17_v55 = vld [vmem:[%s1220_s0 + $0x18] sm:$0xff] }
  0x1c   :  { %v14_v51 = vld [vmem:[%s1220_s0] sm:$0xff]  ;;  %v53_v56 = vld [vmem:[%s1220_s0 + $0x138] sm:$0xff]  ;;  %v20_v59 = vld [vmem:[%s1220_s0 + $0x30] sm:$0xff]  ;;  %vm95_vm1 = vcmask 7168   ;;  %vm518_vm2 = vcmask 261120   ;;  %s817_s12 = scalar_lea.hbm %s1223_s3, 16 }
  0x1d   :  { %761 = vmatpush3.bf16.msra.mxu0 %v760_v45  ;;  %780 = vmatpush3.bf16.msra.mxu1 %v760_v45  ;;  %v50_v52 = vld [vmem:[%s1220_s0 + $0x120] sm:$0xff]  ;;  %v21_v57 = vld [vmem:[%s1220_s0 + $0x38] sm:$0xff]  ;;  %v56_v60 = vld [vmem:[%s1220_s0 + $0x150] sm:$0xff]  ;;  %p818_p0 = scmp.ne.s32.totalorder %s1223_s3, %s817_s12  ;;  %p821_p1 = scmp.lt.u32.totalorder %s817_s12, %s1223_s3 }
  0x1e   :  { %763 = vmatprep.subr.bf16.mxu0 %v762_v46  ;;  %773 = vmatprep.subr.bf16.mxu1 %v762_v46  ;;  %v18_v53 = vld [vmem:[%s1220_s0 + $0x20] sm:$0xff]  ;;  %v57_v58 = vld [vmem:[%s1220_s0 + $0x158] sm:$0xff]  ;;  %v24_v61 = vld [vmem:[%s1220_s0 + $0x50] sm:$0xff] }
  0x1f   :  { %v54_v54 = vld [vmem:[%s1220_s0 + $0x140] sm:$0xff]  ;;  %v60_v62 = vld [vmem:[%s1220_s0 + $0x170] sm:$0xff]  ;;  %v23_v63 = vld [vmem:[%s1220_s0 + $0x48] sm:$0xff]  ;;  %p823_p2 = pnand %p821_p1, %p818_p0 }
  0x20   :  { %v59_v0 = vld [vmem:[%s1220_s0 + $0x168] sm:$0xff]  ;;  %v16_v2 = vld [vmem:[%s1220_s0 + $0x10] sm:$0xff]  ;;  %v26_v3 = vld [vmem:[%s1220_s0 + $0x60] sm:$0xff] }
  0x21   :  { %765 = vmatpush3.bf16.msra.mxu0 %v764_v49  ;;  %781 = vmatpush3.bf16.msra.mxu1 %v764_v49  ;;  %v27_v1 = vld [vmem:[%s1220_s0 + $0x68] sm:$0xff]  ;;  %v30_v5 = vld [vmem:[%s1220_s0 + $0x80] sm:$0xff]  ;;  %v29_v7 = vld [vmem:[%s1220_s0 + $0x78] sm:$0xff] }
  0x22   :  { %708 = vmatprep.subr.msk.mxu1 %vm144_vm0, %v94_v50  ;;  %v19_v4 = vld [vmem:[%s1220_s0 + $0x28] sm:$0xff]  ;;  %v22_v6 = vld [vmem:[%s1220_s0 + $0x40] sm:$0xff]  ;;  %v25_v8 = vld [vmem:[%s1220_s0 + $0x58] sm:$0xff] }
  0x23   :  { %v33_v9 = vld [vmem:[%s1220_s0 + $0x98] sm:$0xff]  ;;  %v28_v10 = vld [vmem:[%s1220_s0 + $0x70] sm:$0xff]  ;;  %v31_v12 = vld [vmem:[%s1220_s0 + $0x88] sm:$0xff] }
  0x24   :  { %213 = vmatmul.mubr.f32.vlgmr.msra.gmra.mrb[0].mxu0 %v14_v51  ;;  %273 = vmatmul.mubr.f32.vlgmr.msra.gmra.mrb[0].mxu1 %v50_v52  ;;  %v32_v11 = vld [vmem:[%s1220_s0 + $0x90] sm:$0xff]  ;;  %v34_v14 = vld [vmem:[%s1220_s0 + $0xa0] sm:$0xff]  ;;  %v35_v15 = vld [vmem:[%s1220_s0 + $0xa8] sm:$0xff] }
  0x25   :  { %217 = vmatprep.mubr.f32.mxu0 %v18_v53  ;;  %277 = vmatprep.mubr.f32.mxu1 %v54_v54  ;;  %v36_v13 = vld [vmem:[%s1220_s0 + $0xb0] sm:$0xff]  ;;  %v37_v16 = vld [vmem:[%s1220_s0 + $0xb8] sm:$0xff]  ;;  %v39_v17 = vld [vmem:[%s1220_s0 + $0xc8] sm:$0xff] }
  0x26   :  { %709 = vmatpush3.msk.msra.mxu1 %vm144_vm0, %v94_v50  ;;  %v40_v18 = vld [vmem:[%s1220_s0 + $0xd0] sm:$0xff]  ;;  %v38_v19 = vld [vmem:[%s1220_s0 + $0xc0] sm:$0xff]  ;;  %v43_v20 = vld [vmem:[%s1220_s0 + $0xe8] sm:$0xff] }
  0x27   :  { %v42_v21 = vld [vmem:[%s1220_s0 + $0xe0] sm:$0xff]  ;;  %v41_v23 = vld [vmem:[%s1220_s0 + $0xd8] sm:$0xff]  ;;  %v52_v26 = vld [vmem:[%s1220_s0 + $0x130] sm:$0xff] }
  0x28   :  { %218 = vmatmul.mubr.f32.gmra.mrb[2].mxu0 %v17_v55  ;;  %278 = vmatmul.mubr.f32.gmra.mrb[2].mxu1 %v53_v56  ;;  %v46_v22 = vld [vmem:[%s1220_s0 + $0x100] sm:$0xff]  ;;  %v49_v24 = vld [vmem:[%s1220_s0 + $0x118] sm:$0xff]  ;;  %v44_v27 = vld [vmem:[%s1220_s0 + $0xf0] sm:$0xff] }
  0x29   :  { %222 = vmatprep.mubr.f32.mxu0 %v21_v57  ;;  %282 = vmatprep.mubr.f32.mxu1 %v57_v58  ;;  %v45_v25 = vld [vmem:[%s1220_s0 + $0xf8] sm:$0xff]  ;;  %v55_v28 = vld [vmem:[%s1220_s0 + $0x148] sm:$0xff]  ;;  %v48_v29 = vld [vmem:[%s1220_s0 + $0x110] sm:$0xff] }
  0x2a   :  { %v58_v30 = vld [vmem:[%s1220_s0 + $0x160] sm:$0xff]  ;;  %v47_v31 = vld [vmem:[%s1220_s0 + $0x108] sm:$0xff]  ;;  %v61_v32 = vld [vmem:[%s1220_s0 + $0x178] sm:$0xff] }
  0x2c   :  { %223 = vmatmul.mubr.f32.gmra.mrb[4].mxu0 %v20_v59  ;;  %283 = vmatmul.mubr.f32.gmra.mrb[4].mxu1 %v56_v60 }
  0x2d   :  { %227 = vmatprep.mubr.f32.mxu0 %v24_v61  ;;  %287 = vmatprep.mubr.f32.mxu1 %v60_v62 }
  0x30   :  { %228 = vmatmul.mubr.f32.gmra.mrb[6].mxu0 %v23_v63  ;;  %288 = vmatmul.mubr.f32.gmra.mrb[6].mxu1 %v59_v0 }
  0x31   :  { %232 = vmatprep.mubr.f32.mxu0 %v27_v1  ;;  %710 = vmatprep.mubr.msk.f32.mxu1 %vm95_vm1, %v16_v2 }
  0x34   :  { %233 = vmatmul.mubr.f32.gmra.mrb[8].mxu0 %v26_v3  ;;  %711 = vmatmul.mubr.msk.f32.vlgmr.msra.gmra.mrb[8].mxu1 %vm95_vm1, %v19_v4 }
  0x35   :  { %237 = vmatprep.mubr.f32.mxu0 %v30_v5  ;;  %713 = vmatprep.mubr.msk.f32.mxu1 %vm95_vm1, %v22_v6 }
  0x38   :  { %238 = vmatmul.mubr.f32.gmra.mrb[10].mxu0 %v29_v7  ;;  %714 = vmatmul.mubr.msk.f32.gmra.mrb[10].mxu1 %vm95_vm1, %v25_v8 }
  0x39   :  { %242 = vmatprep.mubr.f32.mxu0 %v33_v9  ;;  %716 = vmatprep.mubr.msk.f32.mxu1 %vm95_vm1, %v28_v10 }
  0x3c   :  { %243 = vmatmul.mubr.f32.gmra.mrb[12].mxu0 %v32_v11  ;;  %717 = vmatmul.mubr.msk.f32.gmra.mrb[12].mxu1 %vm95_vm1, %v31_v12 }
  0x3d   :  { %247 = vmatprep.mubr.f32.mxu0 %v36_v13  ;;  %719 = vmatprep.mubr.msk.f32.mxu1 %vm95_vm1, %v34_v14 }
  0x40   :  { %248 = vmatmul.mubr.f32.gmra.mrb[14].mxu0 %v35_v15  ;;  %720 = vmatmul.mubr.msk.f32.gmra.mrb[14].mxu1 %vm95_vm1, %v37_v16 }
  0x41   :  { %252 = vmatprep.mubr.f32.mxu0 %v39_v17  ;;  %722 = vmatprep.mubr.msk.f32.mxu1 %vm95_vm1, %v40_v18 }
  0x44   :  { %253 = vmatmul.mubr.f32.gmra.mrb[16].mxu0 %v38_v19  ;;  %723 = vmatmul.mubr.msk.f32.gmra.mrb[16].mxu1 %vm95_vm1, %v43_v20 }
  0x45   :  { %257 = vmatprep.mubr.f32.mxu0 %v42_v21  ;;  %725 = vmatprep.mubr.msk.f32.mxu1 %vm95_vm1, %v46_v22 }
  0x48   :  { %258 = vmatmul.mubr.f32.gmra.mrb[18].mxu0 %v41_v23  ;;  %726 = vmatmul.mubr.msk.f32.gmra.mrb[18].mxu1 %vm95_vm1, %v49_v24 }
  0x49   :  { %262 = vmatprep.mubr.f32.mxu0 %v45_v25  ;;  %728 = vmatprep.mubr.msk.f32.mxu1 %vm95_vm1, %v52_v26 }
  0x4c   :  { %263 = vmatmul.mubr.f32.gmra.mrb[20].mxu0 %v44_v27  ;;  %729 = vmatmul.mubr.msk.f32.gmra.mrb[20].mxu1 %vm95_vm1, %v55_v28 }
  0x4d   :  { %267 = vmatprep.mubr.f32.mxu0 %v48_v29  ;;  %731 = vmatprep.mubr.msk.f32.mxu1 %vm95_vm1, %v58_v30 }
  0x50   :  { %268 = vmatmul.mubr.f32.gmra.mrb[22].mxu0 %v47_v31  ;;  %732 = vmatmul.mubr.msk.f32.gmra.mrb[22].mxu1 %vm95_vm1, %v61_v32 }
  0xf7   :  { %v643_v33 = vpop.f32.mrb[0].mxu0  ;;  %v679_v34 = vpop.f32.mrb[0].mxu1 }
  0xf8   :  { %v644_v35 = vpop.f32.mrb[1].mxu0  ;;  %v680_v36 = vpop.f32.mrb[1].mxu1 }
  0xf9   :  { %v645_v37 = vadd.f32 %v644_v35, %v643_v33  ;;  %v1109_v38 = vadd.f32 %v680_v36, %v679_v34 }
  0xfb   :  { %v646_v39 = vpop.f32.mrb[2].mxu0  ;;  %v682_v40 = vpop.f32.mrb[2].mxu1 }
  0xfc   :  { %v647_v41 = vpop.f32.mrb[3].mxu0  ;;  %v683_v42 = vpop.f32.mrb[3].mxu1 }
  0xfd   :  { %v648_v43 = vadd.f32 %v647_v41, %v646_v39  ;;  %v1111_v44 = vadd.f32 %v683_v42, %v682_v40 }
  0xff   :  { %v649_v45 = vpop.f32.mrb[4].mxu0  ;;  %v685_v46 = vpop.f32.mrb[4].mxu1 }
 0x100   :  { %v650_v47 = vpop.f32.mrb[5].mxu0  ;;  %v686_v48 = vpop.f32.mrb[5].mxu1 }
 0x101   :  { %v651_v49 = vadd.f32 %v650_v47, %v649_v45  ;;  %v1113_v50 = vadd.f32 %v686_v48, %v685_v46 }
 0x103   :  { %v652_v51 = vpop.f32.mrb[6].mxu0  ;;  %v688_v52 = vpop.f32.mrb[6].mxu1 }
 0x104   :  { %v653_v53 = vpop.f32.mrb[7].mxu0  ;;  %v689_v54 = vpop.f32.mrb[7].mxu1 }
 0x105   :  { %v654_v55 = vadd.f32 %v653_v53, %v652_v51  ;;  %v1115_v56 = vadd.f32 %v689_v54, %v688_v52 }
 0x107   :  { %v655_v57 = vpop.f32.mrb[8].mxu0  ;;  %v712_v58 = vpop.f32.mrb[8].mxu1 }
 0x108   :  { %v365_v59 = vadd.f32 %v712_v58, %v648_v43  ;;  %v656_v60 = vpop.f32.mrb[9].mxu0  ;;  %v359_v61 = vpop.f32.mrb[9].mxu1 }
 0x109   :  { %v657_v62 = vadd.f32 %v656_v60, %v655_v57  ;;  %v360_v63 = vadd.f32 %v645_v37, %v359_v61 }
 0x10a   :  { %v439_v0 = vmax.f32 %v365_v59, 1e-10 }
 0x10b   :  { %v438_v1 = vmax.f32 %v360_v63, 1e-10  ;;  %v658_v2 = vpop.f32.mrb[10].mxu0  ;;  %v715_v3 = vpop.f32.mrb[10].mxu1 }
 0x10c   :  { %785 = vlog2.f32 %v439_v0  ;;  %v375_v4 = vadd.f32 %v715_v3, %v654_v55  ;;  %v659_v5 = vpop.f32.mrb[11].mxu0  ;;  %v369_v6 = vpop.f32.mrb[11].mxu1 }
 0x10d   :  { %787 = vlog2.f32 %v438_v1  ;;  %v660_v7 = vadd.f32 %v659_v5, %v658_v2  ;;  %v370_v8 = vadd.f32 %v651_v49, %v369_v6 }
 0x10e   :  { %v441_v9 = vmax.f32 %v375_v4, 1e-10 }
 0x10f   :  { %v440_v10 = vmax.f32 %v370_v8, 1e-10  ;;  %v661_v11 = vpop.f32.mrb[12].mxu0  ;;  %v718_v12 = vpop.f32.mrb[12].mxu1 }
 0x110   :  { %789 = vlog2.f32 %v441_v9  ;;  %v385_v13 = vadd.f32 %v718_v12, %v660_v7  ;;  %v662_v14 = vpop.f32.mrb[13].mxu0  ;;  %v379_v15 = vpop.f32.mrb[13].mxu1 }
 0x111   :  { %791 = vlog2.f32 %v440_v10  ;;  %v663_v16 = vadd.f32 %v662_v14, %v661_v11  ;;  %v380_v17 = vadd.f32 %v657_v62, %v379_v15 }
 0x112   :  { %v443_v18 = vmax.f32 %v385_v13, 1e-10 }
 0x113   :  { %v442_v19 = vmax.f32 %v380_v17, 1e-10  ;;  %v664_v20 = vpop.f32.mrb[14].mxu0  ;;  %v721_v21 = vpop.f32.mrb[14].mxu1 }
 0x114   :  { %793 = vlog2.f32 %v443_v18  ;;  %v665_v22 = vpop.f32.mrb[15].mxu0  ;;  %v389_v23 = vpop.f32.mrb[15].mxu1 }
 0x115   :  { %795 = vlog2.f32 %v442_v19  ;;  %v666_v24 = vadd.f32 %v665_v22, %v664_v20  ;;  %v390_v25 = vadd.f32 %v663_v16, %v389_v23 }
 0x116   :  { %v786_v26 = vpop.eup %785 }
 0x117   :  { %v788_v27 = vpop.eup %787  ;;  %v457_v28 = vmul.f32 0.6931472, %v786_v26  ;;  %v395_v29 = vadd.f32 %v721_v21, %v666_v24  ;;  %v444_v30 = vmax.f32 %v390_v25, 1e-10  ;;  %v667_v31 = vpop.f32.mrb[16].mxu0 }
 0x118   :  { %v724_v32 = vpop.f32.mrb[16].mxu1  ;;  %v455_v33 = vmul.f32 0.6931472, %v788_v27  ;;  %v668_v34 = vpop.f32.mrb[17].mxu0 }
 0x119   :  { %v399_v35 = vpop.f32.mrb[17].mxu1  ;;  %v487_v36 = vmul.f32 0.4342945, %v457_v28  ;;  %v445_v37 = vmax.f32 %v395_v29, 1e-10  ;;  %797 = vlog2.f32 %v444_v30  ;;  %v669_v39 = vadd.f32 %v668_v34, %v667_v31 }
 0x11a   :  { %v790_v40 = vpop.eup %789  ;;  %v486_v41 = vmul.f32 0.4342945, %v455_v33 }
 0x11b   :  { %v792_v42 = vpop.eup %791  ;;  %v503_v43 = vmul.f32 10.0, %v487_v36  ;;  %v461_v45 = vmul.f32 0.6931472, %v790_v40  ;;  %799 = vlog2.f32 %v445_v37  ;;  %v400_v46 = vadd.f32 %v669_v39, %v399_v35  ;;  %v670_v47 = vpop.f32.mrb[18].mxu0 }
 0x11c   :  { %v727_v48 = vpop.f32.mrb[18].mxu1  ;;  %v502_v49 = vmul.f32 10.0, %v486_v41  ;;  %v459_v51 = vmul.f32 0.6931472, %v792_v42  ;;  %v671_v52 = vpop.f32.mrb[19].mxu0 }
 0x11d   :  { %v409_v53 = vpop.f32.mrb[19].mxu1  ;;  %520 = vst.msk [vmem:[%s1222_s2 + $0x8] sm:$0xff] %vm518_vm2, %v503_v43  ;;  %v489_v54 = vmul.f32 0.4342945, %v461_v45  ;;  %v672_v57 = vadd.f32 %v671_v52, %v670_v47  ;;  %v1134_v10 = vsel %vm518_vm2, %v503_v43, -inf }
 0x11e   :  { %v446_v55 = vmax.f32 %v400_v46, 1e-10  ;;  %v794_v58 = vpop.eup %793  ;;  %519 = vst.msk [vmem:[%s1222_s2] sm:$0xff] %vm518_vm2, %v502_v49  ;;  %v488_v59 = vmul.f32 0.4342945, %v459_v51  ;;  %v535_v14 = vsel %vm518_vm2, %v502_v49, -inf }
 0x11f   :  { %v796_v60 = vpop.eup %795  ;;  %v1125_v61 = vmul.f32 10.0, %v489_v54  ;;  %v465_v62 = vmul.f32 0.6931472, %v794_v58  ;;  %v405_v63 = vadd.f32 %v724_v32, %v672_v57  ;;  %v673_v0 = vpop.f32.mrb[20].mxu0 }
 0x120   :  { %801 = vlog2.f32 %v446_v55  ;;  %v730_v1 = vpop.f32.mrb[20].mxu1  ;;  %v504_v2 = vmul.f32 10.0, %v488_v59  ;;  %v463_v3 = vmul.f32 0.6931472, %v796_v60  ;;  %v674_v5 = vpop.f32.mrb[21].mxu0 }
 0x121   :  { %v425_v4 = vadd.f32 %v730_v1, %v1111_v44  ;;  %v419_v6 = vpop.f32.mrb[21].mxu1  ;;  %522 = vst.msk [vmem:[%s1222_s2 + $0x18] sm:$0xff] %vm518_vm2, %v1125_v61  ;;  %v491_v7 = vmul.f32 0.4342945, %v465_v62  ;;  %v675_v9 = vadd.f32 %v674_v5, %v673_v0  ;;  %v538_v46 = vsel %vm518_vm2, %v1125_v61, -inf }
 0x122   :  { %v447_v8 = vmax.f32 %v405_v63, 1e-10  ;;  %521 = vst.msk [vmem:[%s1222_s2 + $0x10] sm:$0xff] %vm518_vm2, %v504_v2  ;;  %v490_v44 = vmul.f32 0.4342945, %v463_v3  ;;  %v420_v12 = vadd.f32 %v1109_v38, %v419_v6  ;;  %v537_v41 = vsel %vm518_vm2, %v504_v2, -inf }
 0x123   :  { %v451_v11 = vmax.f32 %v425_v4, 1e-10  ;;  %v798_v13 = vpop.eup %797  ;;  %v507_v15 = vmul.f32 10.0, %v491_v7  ;;  %v410_v16 = vadd.f32 %v675_v9, %v409_v53  ;;  %v676_v17 = vpop.f32.mrb[22].mxu0 }
 0x124   :  { %803 = vlog2.f32 %v447_v8  ;;  %v733_v18 = vpop.f32.mrb[22].mxu1  ;;  %v506_v19 = vmul.f32 10.0, %v490_v44  ;;  %v467_v20 = vmul.f32 0.6931472, %v798_v13  ;;  %v450_v21 = vmax.f32 %v420_v12, 1e-10 }
 0x125   :  { %805 = vlog2.f32 %v451_v11  ;;  %v677_v22 = vpop.f32.mrb[23].mxu0  ;;  %v800_v23 = vpop.eup %799  ;;  %524 = vst.msk [vmem:[%s1222_s2 + $0x28] sm:$0xff] %vm518_vm2, %v507_v15  ;;  %v541_v38 = vsel %vm518_vm2, %v507_v15, -inf  ;;  %v448_v24 = vmax.f32 %v410_v16, 1e-10  ;;  %v435_v25 = vadd.f32 %v733_v18, %v1115_v56 }
 0x126   :  { %v678_v26 = vadd.f32 %v677_v22, %v676_v17  ;;  %v429_v27 = vpop.f32.mrb[23].mxu1  ;;  %523 = vst.msk [vmem:[%s1222_s2 + $0x20] sm:$0xff] %vm518_vm2, %v506_v19  ;;  %v539_v28 = vsel %vm518_vm2, %v506_v19, -inf  ;;  %v469_v29 = vmul.f32 0.6931472, %v800_v23  ;;  %807 = vlog2.f32 %v450_v21 }
 0x127   :  { %v492_v30 = vmul.f32 0.4342945, %v467_v20  ;;  %809 = vlog2.f32 %v448_v24  ;;  %v453_v31 = vmax.f32 %v435_v25, 1e-10  ;;  %v430_v33 = vadd.f32 %v1113_v50, %v429_v27 }
 0x128   :  { %v415_v32 = vadd.f32 %v727_v48, %v678_v26  ;;  %v493_v34 = vmul.f32 0.4342945, %v469_v29  ;;  %v540_v56 = vmax.f32 %v535_v14, %v539_v28  ;;  %v542_v36 = vmax.f32 %v1134_v10, %v541_v38 }
 0x129   :  { %v508_v35 = vmul.f32 10.0, %v492_v30  ;;  %811 = vlog2.f32 %v453_v31  ;;  %v452_v40 = vmax.f32 %v430_v33, 1e-10 }
 0x12a   :  { %v802_v37 = vpop.eup %801  ;;  %v449_v39 = vmax.f32 %v415_v32, 1e-10  ;;  %v509_v42 = vmul.f32 10.0, %v493_v34 }
 0x12b   :  { %525 = vst.msk [vmem:[%s1222_s2 + $0x30] sm:$0xff] %vm518_vm2, %v508_v35  ;;  %v543_v43 = vsel %vm518_vm2, %v508_v35, -inf  ;;  %v471_v50 = vmul.f32 0.6931472, %v802_v37 }
 0x12c   :  { %813 = vlog2.f32 %v449_v39  ;;  %v544_v45 = vmax.f32 %v537_v41, %v543_v43  ;;  %526 = vst.msk [vmem:[%s1222_s2 + $0x38] sm:$0xff] %vm518_vm2, %v509_v42  ;;  %v545_v48 = vsel %vm518_vm2, %v509_v42, -inf }
 0x12d   :  { %v494_v47 = vmul.f32 0.4342945, %v471_v50  ;;  %815 = vlog2.f32 %v452_v40  ;;  %v546_v51 = vmax.f32 %v538_v46, %v545_v48 }
 0x12e   :  { %v804_v49 = vpop.eup %803 }
 0x12f   :  { %v806_v52 = vpop.eup %805  ;;  %v510_v53 = vmul.f32 10.0, %v494_v47  ;;  %v473_v54 = vmul.f32 0.6931472, %v804_v49 }
 0x130   :  { %v481_v55 = vmul.f32 0.6931472, %v806_v52  ;;  %v808_v57 = vpop.eup %807 }
 0x131   :  { %527 = vst.msk [vmem:[%s1222_s2 + $0x40] sm:$0xff] %vm518_vm2, %v510_v53  ;;  %v495_v58 = vmul.f32 0.4342945, %v473_v54  ;;  %v547_v59 = vsel %vm518_vm2, %v510_v53, -inf  ;;  %v810_v60 = vpop.eup %809  ;;  %v479_v62 = vmul.f32 0.6931472, %v808_v57 }
 0x132   :  { %v499_v61 = vmul.f32 0.4342945, %v481_v55  ;;  %v548_v63 = vmax.f32 %v540_v56, %v547_v59  ;;  %v475_v1 = vmul.f32 0.6931472, %v810_v60 }
 0x133   :  { %v511_v0 = vmul.f32 10.0, %v495_v58  ;;  %v812_v2 = vpop.eup %811  ;;  %v498_v4 = vmul.f32 0.4342945, %v479_v62 }
 0x134   :  { %v515_v3 = vmul.f32 10.0, %v499_v61  ;;  %v496_v5 = vmul.f32 0.4342945, %v475_v1  ;;  %v485_v6 = vmul.f32 0.6931472, %v812_v2 }
 0x135   :  { %528 = vst.msk [vmem:[%s1222_s2 + $0x48] sm:$0xff] %vm518_vm2, %v511_v0  ;;  %v549_v7 = vsel %vm518_vm2, %v511_v0, -inf  ;;  %v514_v9 = vmul.f32 10.0, %v498_v4 }
 0x136   :  { %v814_v8 = vpop.eup %813  ;;  %532 = vst.msk [vmem:[%s1222_s2 + $0x68] sm:$0xff] %vm518_vm2, %v515_v3  ;;  %v550_v10 = vmax.f32 %v542_v36, %v549_v7  ;;  %v557_v44 = vsel %vm518_vm2, %v515_v3, -inf  ;;  %v512_v12 = vmul.f32 10.0, %v496_v5  ;;  %v501_v13 = vmul.f32 0.4342945, %v485_v6 }
 0x137   :  { %v816_v11 = vpop.eup %815  ;;  %v477_v14 = vmul.f32 0.6931472, %v814_v8  ;;  %531 = vst.msk [vmem:[%s1222_s2 + $0x60] sm:$0xff] %vm518_vm2, %v514_v9  ;;  %v555_v16 = vsel %vm518_vm2, %v514_v9, -inf }
 0x138   :  { %v483_v15 = vmul.f32 0.6931472, %v816_v11  ;;  %v558_v17 = vmax.f32 %v550_v10, %v557_v44  ;;  %529 = vst.msk [vmem:[%s1222_s2 + $0x50] sm:$0xff] %vm518_vm2, %v512_v12  ;;  %v517_v18 = vmul.f32 10.0, %v501_v13  ;;  %v551_v20 = vsel %vm518_vm2, %v512_v12, -inf }
 0x139   :  { %v497_v19 = vmul.f32 0.4342945, %v477_v14  ;;  %v556_v21 = vmax.f32 %v548_v63, %v555_v16  ;;  %v552_v23 = vmax.f32 %v544_v45, %v551_v20 }
 0x13a   :  { %v500_v22 = vmul.f32 0.4342945, %v483_v15  ;;  %534 = vst.msk [vmem:[%s1222_s2 + $0x78] sm:$0xff] %vm518_vm2, %v517_v18  ;;  %v561_v30 = vsel %vm518_vm2, %v517_v18, -inf }
 0x13b   :  { %v513_v38 = vmul.f32 10.0, %v497_v19  ;;  %v563_v24 = vmax.f32 %v556_v21, %v558_v17 }
 0x13c   :  { %v516_v25 = vmul.f32 10.0, %v500_v22 }
 0x13d   :  { %530 = vst.msk [vmem:[%s1222_s2 + $0x58] sm:$0xff] %vm518_vm2, %v513_v38  ;;  %v553_v26 = vsel %vm518_vm2, %v513_v38, -inf }
 0x13e   :  { %533 = vst.msk [vmem:[%s1222_s2 + $0x70] sm:$0xff] %vm518_vm2, %v516_v25  ;;  %v554_v27 = vmax.f32 %v546_v51, %v553_v26  ;;  %v559_v28 = vsel %vm518_vm2, %v516_v25, -inf }
 0x13f   :  { %v560_v29 = vmax.f32 %v552_v23, %v559_v28 }
 0x140   :  { %v562_v31 = vmax.f32 %v554_v27, %v561_v30 }
 0x142   :  { %v564_v32 = vmax.f32 %v560_v29, %v562_v31 }
 0x144   :  { %v565_v33 = vmax.f32 %v563_v24, %v564_v32 }
 0x146   :  { %566 = vmax.xlane.f32.xlu0 %v565_v33 }
 0x1d3   :  { %v567_v34 = vpop.xlane.xlu0 %566 }
 0x1d4   :  { %v568_v35 = vrot.slane %v567_v34, 4 }
 0x1d6   :  { %v569_v56 = vmax.f32 %v567_v34, %v568_v35 }
 0x1d8   :  { %v570_v36 = vrot.slane %v569_v56, 2 }
 0x1da   :  { %v571_v37 = vmax.f32 %v569_v56, %v570_v36 }
 0x1dc   :  { %v572_v39 = vrot.slane %v571_v37, 1 }
 0x1de   :  { %v573_v40 = vmax.f32 %v571_v37, %v572_v39 }
 0x1e0   :  { %782 = vpush %v573_v40 }
 0x211   :  { %s783_s10 = spop %782 }
 0x212   :  { %576 = sst [smem:[#allocation2]] %s783_s10 }
 0x213   :  { %826 = shalt.err (!%p823_p2)
}
 0x214   :  { %s829_s17 = smov [#allocation2]  }
 0x215   :  { %586 = dma.smem_to_hbm %s829_s17, 16, %s1223_s3, [#allocation3]  }
 0x216   :  { %827 = dma.done.wait [#allocation3], 16  }
 0x217   :  { %828 = vsyncadd [#allocation3], 4294967280 }
 0x218   :  { %592 = sfence }
 0x219   :  { %593 = vsyncpa [#allocation3], 1 }

</bundles_post_ra>
